<compile_context>
chip_gen: v6e
topology: v6e:2x2x1
jax: 0.10.0
libtpu: 0.0.40
codegen_flags: <defaults>
</compile_context>

<pallas_src>
from functools import partial

import numpy as np
import jax
import jax.numpy as jnp
from jax import lax
from jax.experimental import pallas as pl
from jax.experimental.pallas import tpu as pltpu

EPS = float(np.finfo(np.float64).eps)  # np.finfo(np.float).eps in the original


def _round_up(a: int, b: int) -> int:
    return ((a + b - 1) // b) * b


def _dependent_lr_kernel(scalars_ref,   # SMEM (4,): [log_lambda_sum, sum_alpha_pos, sum_alpha_neg, bias]
                         x_ref,         # VMEM (TR, 128)   folded samples, fully lane-dense
                         wu_ref,        # VMEM (128, SP)   diff_alpha weights * group selector
                         wpn_ref,       # VMEM (128, 2*SP) [lambda_pos | lambda_neg] * group selector
                         out_ref):      # VMEM (TR, SP)    logits, one lane per sample
    sp = out_ref.shape[-1]

    y = x_ref[...]                       # (TR, 128)
    log_y = jnp.log(y)                   # dense EUP work: exactly F logs per sample, no idle lanes

    # Weighted per-sample feature sums + compaction to one lane per sample on the MXU.
    # HIGHEST precision keeps the f32 contraction accurate (default would downcast to bf16).
    upper = jnp.dot(log_y, wu_ref[...],
                    preferred_element_type=jnp.float32,
                    precision=lax.Precision.HIGHEST)              # (TR, SP)
    s_pn = jnp.dot(y, wpn_ref[...],
                   preferred_element_type=jnp.float32,
                   precision=lax.Precision.HIGHEST)               # (TR, 2*SP) = [s_pos | s_neg]

    # One fused log for both lower-part terms (matches torch's log(1 + s), not log1p).
    logs = jnp.log(1.0 + s_pn)                                    # (TR, 2*SP)
    log_pos = logs[:, :sp]
    log_neg = logs[:, sp:]

    log_lambda_sum = scalars_ref[0]
    sum_alpha_pos = scalars_ref[1]
    sum_alpha_neg = scalars_ref[2]
    bias = scalars_ref[3]

    out_ref[...] = ((bias + log_lambda_sum) + upper
                    + sum_alpha_neg * log_neg - sum_alpha_pos * log_pos)


@partial(jax.jit, static_argnames=("block_rows",))
def dependent_lr_forward(x, alpha_pos, alpha_neg, beta_pos, beta_neg, bias, *, block_rows=2048):
    """Pallas TPU implementation of DependentLR.forward. x: (N, F) float32, x > 0."""
    N, F = x.shape
    if 128 % F != 0:
        # TODO(synk): n_features that does not divide 128 needs a different fold
        # (or the transposed-layout path); not needed for this module's typical F.
        raise NotImplementedError("folded layout requires n_features to divide 128")
    assert block_rows % 8 == 0
    sp = 128 // F                                   # samples per 128-lane row

    # ---- parameter preprocessing (tiny, plain JAX) ----
    ap = jnp.clip(alpha_pos, EPS, jnp.inf)
    an = jnp.clip(alpha_neg, EPS, jnp.inf)
    bp = jnp.clip(beta_pos, EPS, jnp.inf)
    bn = jnp.clip(beta_neg, EPS, jnp.inf)

    lambda_pos = bp[1:] / bp[0]                     # (F,)
    lambda_neg = bn[1:] / bn[0]                     # (F,)
    log_lambdas_upper = ap[1:] * jnp.log(lambda_pos) - an[1:] * jnp.log(lambda_neg)
    diff_alpha = ap[1:] - an[1:]                    # (F,)

    scalars = jnp.stack([jnp.sum(log_lambdas_upper),
                         jnp.sum(ap),
                         jnp.sum(an),
                         bias[0]]).astype(jnp.float32)

    # Group-of-F selector folded together with the per-feature weights:
    # column m of each matrix picks/weights the F lanes belonging to sample m of a row.
    lane = jnp.arange(128)
    feat = lane % F
    grp = lane // F
    sel = (grp[:, None] == jnp.arange(sp)[None, :]).astype(jnp.float32)     # (128, SP)
    w_upper = (sel * diff_alpha[feat][:, None]).astype(jnp.float32)         # (128, SP)
    w_pn = jnp.concatenate([sel * lambda_pos[feat][:, None],
                            sel * lambda_neg[feat][:, None]], axis=1).astype(jnp.float32)  # (128, 2*SP)

    # ---- zero-copy batch fold (no transpose); pad only when N is ragged ----
    x = x.astype(jnp.float32)
    pad_to = sp * 8                                 # keeps R a multiple of 8 (clean sublane tiling)
    n_pad = _round_up(N, pad_to)
    if n_pad != N:
        # Full-array copy only on the ragged path; pad value 1.0 keeps log() finite and
        # the padded lanes are sliced off below.  N % (8*128//F) == 0 is fully copy-free.
        x = jnp.concatenate([x, jnp.ones((n_pad - N, F), jnp.float32)], axis=0)
    r = n_pad // sp
    xf = x.reshape(r, 128)                          # free row-major fold — no data movement

    # Block rows: big tiles for overhead amortization, but >= 4 grid steps when the
    # batch is large enough so v7x megacore can shard the "parallel" axis.
    tr = min(block_rows, max(8, _round_up(pl.cdiv(r, 4), 8)))
    grid = (pl.cdiv(r, tr),)

    cost = pl.CostEstimate(
        flops=int(2 * 128 * 3 * sp * r + 12 * n_pad),
        transcendentals=int(n_pad * (F + 2)),
        bytes_accessed=int(n_pad * (4 * F + 4) + 4 * 128 * 3 * sp),
    )

    out = pl.pallas_call(
        _dependent_lr_kernel,
        out_shape=jax.ShapeDtypeStruct((r, sp), jnp.float32),
        grid_spec=pltpu.PrefetchScalarGridSpec(
            num_scalar_prefetch=1,
            grid=grid,
            in_specs=[
                pl.BlockSpec((tr, 128), lambda i, s: (i, 0)),        # folded x
                pl.BlockSpec((128, sp), lambda i, s: (0, 0)),        # upper-part weights (resident)
                pl.BlockSpec((128, 2 * sp), lambda i, s: (0, 0)),    # lower-part weights (resident)
            ],
            out_specs=pl.BlockSpec((tr, sp), lambda i, s: (i, 0)),
        ),
        compiler_params=pltpu.CompilerParams(
            dimension_semantics=("parallel",)),
        cost_estimate=cost,
    )(scalars, xf, w_upper, w_pn)

    return out.reshape(-1)[:N]                      # (N,) logits, matching torch's 1-D output


def dependent_lr_reference(x, alpha_pos, alpha_neg, beta_pos, beta_neg, bias):
    """Pure-JAX reference mirroring the torch forward."""
    alpha_pos = jnp.clip(alpha_pos, EPS, jnp.inf)
    alpha_neg = jnp.clip(alpha_neg, EPS, jnp.inf)
    beta_pos = jnp.clip(beta_pos, EPS, jnp.inf)
    beta_neg = jnp.clip(beta_neg, EPS, jnp.inf)
    lambda_pos = beta_pos[1:] / beta_pos[0]
    lambda_neg = beta_neg[1:] / beta_neg[0]
    log_lambdas_upper = alpha_pos[1:] * jnp.log(lambda_pos) - alpha_neg[1:] * jnp.log(lambda_neg)
    differences_alpha_upper = alpha_pos[1:] - alpha_neg[1:]
    log_values_upper = jnp.log(x)
    upper_part = jnp.sum(log_lambdas_upper + differences_alpha_upper * log_values_upper, axis=1)
    sum_alpha_pos = jnp.sum(alpha_pos)
    sum_alpha_neg = jnp.sum(alpha_neg)
    log_sum_lower_pos = jnp.log(1.0 + jnp.sum(lambda_pos * x, axis=1))
    log_sum_lower_neg = jnp.log(1.0 + jnp.sum(lambda_neg * x, axis=1))
    lower_part = sum_alpha_neg * log_sum_lower_neg - sum_alpha_pos * log_sum_lower_pos
    return bias[0] + upper_part + lower_part


if __name__ == "__main__":
    key = jax.random.PRNGKey(0)
    n_features = 4                 # F: number of input features per sample
    n_dims = n_features + 1

    k_x1, k_x2, k_ap, k_an, k_bp, k_bn, k_b = jax.random.split(key, 7)

    # deterministic "parameter" init mirroring torch uniform_(1+eps, 2) / uniform_(-1, 1)
    alpha_pos = jax.random.uniform(k_ap, (n_dims,), jnp.float32, 1.0 + EPS, 2.0)
    alpha_neg = jax.random.uniform(k_an, (n_dims,), jnp.float32, 1.0 + EPS, 2.0)
    beta_pos = jax.random.uniform(k_bp, (n_dims,), jnp.float32, 1.0 + EPS, 2.0)
    beta_neg = jax.random.uniform(k_bn, (n_dims,), jnp.float32, 1.0 + EPS, 2.0)
    bias = jax.random.uniform(k_b, (1,), jnp.float32, -1.0, 1.0)

    # Case 1: ragged batch (N=200 is not a multiple of 256 — exercises the pad path).
    N1 = 200
    x1 = jax.random.uniform(k_x1, (N1, n_features), jnp.float32, 1e-3, 1.0 - 1e-3)
    out1 = jax.block_until_ready(
        dependent_lr_forward(x1, alpha_pos, alpha_neg, beta_pos, beta_neg, bias))
    ref1 = dependent_lr_reference(x1, alpha_pos, alpha_neg, beta_pos, beta_neg, bias)
    np.testing.assert_allclose(np.asarray(out1), np.asarray(ref1), rtol=1e-5, atol=1e-5)

    # Case 2: N % 256 == 0 — copy-free fold and a multi-step grid.
    N2 = 512
    x2 = jax.random.uniform(k_x2, (N2, n_features), jnp.float32, 1e-3, 1.0 - 1e-3)
    out2 = jax.block_until_ready(
        dependent_lr_forward(x2, alpha_pos, alpha_neg, beta_pos, beta_neg, bias))
    ref2 = dependent_lr_reference(x2, alpha_pos, alpha_neg, beta_pos, beta_neg, bias)
    np.testing.assert_allclose(np.asarray(out2), np.asarray(ref2), rtol=1e-5, atol=1e-5)

    print("KERNEL_OK")
</pallas_src>

<mosaic_0001>
module attributes {stable_mosaic.version = 11 : i64} {
  func.func @_dependent_lr_kernel(%arg0: i32, %arg1: memref<4xf32, #tpu.memory_space<smem>>, %arg2: memref<8x128xf32, #tpu.memory_space<vmem>>, %arg3: memref<128x32xf32, #tpu.memory_space<vmem>>, %arg4: memref<128x64xf32, #tpu.memory_space<vmem>>, %arg5: memref<8x32xf32, #tpu.memory_space<vmem>>) attributes {dimension_semantics = [#tpu.dimension_semantics<parallel>], iteration_bounds = array<i64: 1>, scalar_prefetch = 1 : i64, scratch_operands = 0 : i64, tpu.core_type = #tpu.core_type<tc>, window_params = [{transform_indices = @transform_0, window_bounds = array<i64: 8, 128>}, {pipeline_mode = #tpu.pipeline_mode<synchronous>, transform_indices = @transform_1, window_bounds = array<i64: 128, 32>}, {pipeline_mode = #tpu.pipeline_mode<synchronous>, transform_indices = @transform_2, window_bounds = array<i64: 128, 64>}, {transform_indices = @transform_3, window_bounds = array<i64: 8, 32>}]} {
    %c0 = arith.constant 0 : index
    %c0_0 = arith.constant 0 : index
    %0 = vector.load %arg2[%c0, %c0_0] : memref<8x128xf32, #tpu.memory_space<vmem>>, vector<8x128xf32>
    %1 = math.log %0 : vector<8x128xf32>
    %c0_1 = arith.constant 0 : index
    %c0_2 = arith.constant 0 : index
    %2 = vector.load %arg3[%c0_1, %c0_2] : memref<128x32xf32, #tpu.memory_space<vmem>>, vector<128x32xf32>
    %cst = arith.constant dense<0.000000e+00> : vector<8x32xf32>
    %3 = tpu.matmul %1, %2, %cst {dimension_numbers = #tpu.dot_dimension_numbers<[1], [0], [0], [1], [0, 0, 1, 1], [], []>, precision = #tpu.contract_precision<fp32>} : vector<8x128xf32>, vector<128x32xf32>, vector<8x32xf32> -> vector<8x32xf32>
    %c0_3 = arith.constant 0 : index
    %c0_4 = arith.constant 0 : index
    %4 = vector.load %arg4[%c0_3, %c0_4] : memref<128x64xf32, #tpu.memory_space<vmem>>, vector<128x64xf32>
    %cst_5 = arith.constant dense<0.000000e+00> : vector<8x64xf32>
    %5 = tpu.matmul %0, %4, %cst_5 {dimension_numbers = #tpu.dot_dimension_numbers<[1], [0], [0], [1], [0, 0, 1, 1], [], []>, precision = #tpu.contract_precision<fp32>} : vector<8x128xf32>, vector<128x64xf32>, vector<8x64xf32> -> vector<8x64xf32>
    %cst_6 = arith.constant 1.000000e+00 : f32
    %6 = vector.broadcast %cst_6 : f32 to vector<8x64xf32>
    %7 = arith.addf %6, %5 : vector<8x64xf32>
    %8 = math.log %7 : vector<8x64xf32>
    %9 = vector.extract_strided_slice %8 {offsets = [0, 0], sizes = [8, 32], strides = [1, 1]} : vector<8x64xf32> to vector<8x32xf32>
    %10 = vector.extract_strided_slice %8 {offsets = [0, 32], sizes = [8, 32], strides = [1, 1]} : vector<8x64xf32> to vector<8x32xf32>
    %c0_7 = arith.constant 0 : index
    %11 = memref.load %arg1[%c0_7] : memref<4xf32, #tpu.memory_space<smem>>
    %c1 = arith.constant 1 : index
    %12 = memref.load %arg1[%c1] : memref<4xf32, #tpu.memory_space<smem>>
    %c2 = arith.constant 2 : index
    %13 = memref.load %arg1[%c2] : memref<4xf32, #tpu.memory_space<smem>>
    %c3 = arith.constant 3 : index
    %14 = memref.load %arg1[%c3] : memref<4xf32, #tpu.memory_space<smem>>
    %15 = arith.addf %14, %11 : f32
    %16 = vector.broadcast %15 : f32 to vector<8x32xf32>
    %17 = arith.addf %16, %3 : vector<8x32xf32>
    %18 = vector.broadcast %13 : f32 to vector<8x32xf32>
    %19 = arith.mulf %18, %10 : vector<8x32xf32>
    %20 = arith.addf %17, %19 : vector<8x32xf32>
    %21 = vector.broadcast %12 : f32 to vector<8x32xf32>
    %22 = arith.mulf %21, %9 : vector<8x32xf32>
    %23 = arith.subf %20, %22 : vector<8x32xf32>
    %c0_8 = arith.constant 0 : index
    %c0_9 = arith.constant 0 : index
    %24 = vector.load %arg5[%c0_8, %c0_9] : memref<8x32xf32, #tpu.memory_space<vmem>>, vector<8x32xf32>
    tpu.vector_store %arg5[%c0_8, %c0_9], %23 {strides = array<i32>} : memref<8x32xf32, #tpu.memory_space<vmem>>, vector<8x32xf32>,
    return
  }
  func.func @transform_0(%arg0: i32, %arg1: memref<4xf32, #tpu.memory_space<smem>>) -> (i32, i32) {
    %c0_i32 = arith.constant 0 : i32
    %c0_i32_0 = arith.constant 0 : i32
    return %arg0, %c0_i32 : i32, i32
  }
  func.func @transform_1(%arg0: i32, %arg1: memref<4xf32, #tpu.memory_space<smem>>) -> (i32, i32) {
    %c0_i32 = arith.constant 0 : i32
    %c0_i32_0 = arith.constant 0 : i32
    %c0_i32_1 = arith.constant 0 : i32
    return %c0_i32, %c0_i32_0 : i32, i32
  }
  func.func @transform_2(%arg0: i32, %arg1: memref<4xf32, #tpu.memory_space<smem>>) -> (i32, i32) {
    %c0_i32 = arith.constant 0 : i32
    %c0_i32_0 = arith.constant 0 : i32
    %c0_i32_1 = arith.constant 0 : i32
    return %c0_i32, %c0_i32_0 : i32, i32
  }
  func.func @transform_3(%arg0: i32, %arg1: memref<4xf32, #tpu.memory_space<smem>>) -> (i32, i32) {
    %c0_i32 = arith.constant 0 : i32
    %c0_i32_0 = arith.constant 0 : i32
    return %arg0, %c0_i32 : i32, i32
  }
}

</mosaic_0001>

<bundles_post_ra>
// kernel: dependent_lr_forward.1
= control target key start
LH: loop header
LB: loop body
LE: loop exit
PB: predicated region body
PF: predicated region fallthrough
CT: control target
= control target key end

     0   :  { %s2877_s0 = inlined_call_operand.vmem [shape: f32[4], index: 0, kind: input, shape index: {}]   ;;  %s2878_s1 = inlined_call_operand.vmem [shape: f32[8,128], index: 1, kind: input, shape index: {}]   ;;  %s2879_s2 = inlined_call_operand.vmem [shape: f32[128,32], index: 2, kind: input, shape index: {}]   ;;  %s2880_s3 = inlined_call_operand.vmem [shape: f32[128,64], index: 3, kind: input, shape index: {}]   ;;  %s2881_s4 = inlined_call_operand.vmem [shape: f32[8,32], index: 4, kind: output, shape index: {}]  }
   0x1   :  { %s9_s17 = sshll.u32 %s2877_s0, 4  ;;  %s10_s17 = int_to_ptr.vmem [resolvable:$true] %s9_s17 }
   0x2   :  { %s1998_s18 = scalar_lea.vmem %s10_s17, 16  ;;  %p2003_p1 = scmp.lt.s32.totalorder %s10_s17, %s10_s17 }
   0x3   :  { %p1999_p0 = scmp.ne.s32.totalorder %s10_s17, %s1998_s18  ;;  %p2004_p2 = scmp.lt.s32.totalorder %s1998_s18, %s1998_s18 }
   0x5   :  { %p2005_p3 = por %p2004_p2, %p2003_p1 }
   0x7   :  { %p2006_p4 = pnand %p2005_p3, %p1999_p0 }
   0x9   :  { %2009 = shalt.err (!%p2006_p4)  }
   0xa   :  { %s2012_s19 = smov [#allocation3]  }
   0xb   :  { %12 = dma.vmem_to_smem %s10_s17, 16, %s2012_s19, [#allocation2] }
   0xc   :  { %2010 = dma.done.wait [#allocation2], 16 }
   0xd   :  { %2011 = vsyncadd [#allocation2], 4294967280 }
   0xe   :  { %14 = sfence }
   0xf   :  { %v39_v0 = vld [vmem:[%s2879_s2 + $0x78] sm:$0xff]  ;;  %v38_v1 = vld [vmem:[%s2879_s2 + $0x70] sm:$0xff]  ;;  %v37_v2 = vld [vmem:[%s2879_s2 + $0x68] sm:$0xff]  ;;  %v2013_v3 = vmov 0.0   ;;  %vm2014_vm0 = vmmov 0   ;;  %s2015_s27 = smov 96  }
  0x10   :  { %1570 = vmatprep.subr.mxu0 %v2013_v3  ;;  %v2054_v4 = vand.u32 4294901760, %v39_v0  ;;  %v2056_v5 = vand.u32 4294901760, %v38_v1  ;;  %v2058_v6 = vand.u32 4294901760, %v37_v2  ;;  %v36_v7 = vld [vmem:[%s2879_s2 + $0x60] sm:$0xff]  ;;  %1605 = vmatprep.subr.mxu1 %v2013_v3  ;;  %v35_v8 = vld [vmem:[%s2879_s2 + $0x58] sm:$0xff]  ;;  %v34_v9 = vld [vmem:[%s2879_s2 + $0x50] sm:$0xff] }
  0x11   :  { %v2070_v10 = vand.u32 4294901760, %v36_v7  ;;  %v2072_v11 = vand.u32 4294901760, %v35_v8  ;;  %v2074_v12 = vand.u32 4294901760, %v34_v9  ;;  %v33_v13 = vld [vmem:[%s2879_s2 + $0x48] sm:$0xff]  ;;  %v32_v14 = vld [vmem:[%s2879_s2 + $0x40] sm:$0xff]  ;;  %1602 = vmatprep.mubr.msk.f32.mxu0 %vm2014_vm0, %v2013_v3  ;;  %1637 = vmatprep.mubr.msk.f32.mxu1 %vm2014_vm0, %v2013_v3  ;;  %v31_v19 = vld [vmem:[%s2879_s2 + $0x38] sm:$0xff] }
  0x12   :  { %1571 = vmatpush3.msra.mxu0 %v2054_v4  ;;  %v2088_v15 = vsub.f32 %v39_v0, %v2054_v4  ;;  %v2091_v16 = vsub.f32 %v38_v1, %v2056_v5  ;;  %v2093_v17 = vand.u32 4294901760, %v33_v13  ;;  %v2096_v18 = vsub.f32 %v37_v2, %v2058_v6  ;;  %v30_v26 = vld [vmem:[%s2879_s2 + $0x30] sm:$0xff]  ;;  %v29_v36 = vld [vmem:[%s2879_s2 + $0x28] sm:$0xff]  ;;  %v28_v41 = vld [vmem:[%s2879_s2 + $0x20] sm:$0xff]  ;;  %s1340_s28 = sld [smem:[#allocation3]] }
  0x13   :  { %1572 = vmatprep.subr.mxu0 %v2013_v3  ;;  %v2103_v20 = vsub.f32 %v36_v7, %v2070_v10  ;;  %v2106_v21 = vsub.f32 %v35_v8, %v2072_v11  ;;  %v2112_v25 = vand.u32 4294901760, %v32_v14  ;;  %v2119_v28 = vand.u32 4294901760, %v31_v19  ;;  %v2169_v48 = vld [vmem:[%s2878_s1] sm:$0xff]  ;;  %v27_v50 = vld [vmem:[%s2879_s2 + $0x18] sm:$0xff]  ;;  %v26_v54 = vld [vmem:[%s2879_s2 + $0x10] sm:$0xff]  ;;  %s1365_s29 = sld [smem:[#allocation3 + $0x3]] }
  0x14   :  { %1573 = vmatpush3.msra.mxu0 %v2056_v5  ;;  %v134_v22 = vand.u32 4294901760, %v2088_v15  ;;  %v141_v23 = vand.u32 4294901760, %v2091_v16  ;;  %v148_v24 = vand.u32 4294901760, %v2096_v18  ;;  %v2123_v30 = vsub.f32 %v34_v9, %v2074_v12  ;;  %v25_v60 = vld [vmem:[%s2879_s2 + $0x8] sm:$0xff]  ;;  %v24_v2 = vld [vmem:[%s2879_s2] sm:$0xff]  ;;  %s1363_s30 = sld [smem:[#allocation3 + $0x1]] }
  0x15   :  { %1574 = vmatprep.subr.mxu0 %v2013_v3  ;;  %v155_v27 = vand.u32 4294901760, %v2103_v20  ;;  %v162_v29 = vand.u32 4294901760, %v2106_v21  ;;  %v2136_v34 = vsub.f32 %v33_v13, %v2093_v17  ;;  %v2139_v35 = vand.u32 4294901760, %v30_v26 }
  0x16   :  { %1575 = vmatpush3.msra.mxu0 %v2058_v6  ;;  %v135_v31 = vsub.f32 %v2088_v15, %v134_v22  ;;  %v142_v32 = vsub.f32 %v2091_v16, %v141_v23  ;;  %v149_v33 = vsub.f32 %v2096_v18, %v148_v24  ;;  %v169_v40 = vand.u32 4294901760, %v2123_v30 }
  0x17   :  { %1576 = vmatprep.subr.mxu0 %v2013_v3  ;;  %v156_v39 = vsub.f32 %v2103_v20, %v155_v27  ;;  %v163_v42 = vsub.f32 %v2106_v21, %v162_v29  ;;  %v2157_v43 = vsub.f32 %v32_v14, %v2112_v25  ;;  %v2160_v45 = vand.u32 4294901760, %v29_v36 }
  0x18   :  { %1577 = vmatpush3.msra.mxu0 %v2070_v10  ;;  %v136_v37 = vand.u32 4294901760, %v135_v31  ;;  %v143_v38 = vand.u32 4294901760, %v142_v32  ;;  %v150_v44 = vand.u32 4294901760, %v149_v33  ;;  %v176_v46 = vand.u32 4294901760, %v2136_v34 }
  0x19   :  { %1578 = vmatprep.subr.mxu0 %v2013_v3  ;;  %v2164_v47 = vsub.f32 %v31_v19, %v2119_v28  ;;  %v2173_v49 = vand.u32 4294901760, %v28_v41  ;;  %v157_v51 = vand.u32 4294901760, %v156_v39  ;;  %v170_v52 = vsub.f32 %v2123_v30, %v169_v40  ;;  %s1344_s5 = sadd.f32 %s1365_s29, %s1340_s28 }
  0x1a   :  { %1579 = vmatpush3.msra.mxu0 %v2072_v11  ;;  %1606 = vmatpush3.msra.mxu1 %v136_v37  ;;  %v183_v53 = vand.u32 4294901760, %v2157_v43  ;;  %v2187_v55 = vsub.f32 %v30_v26, %v2139_v35  ;;  %v164_v56 = vand.u32 4294901760, %v163_v42  ;;  %1994 = vlog2.f32 %v2169_v48 }
  0x1b   :  { %1580 = vmatprep.subr.mxu0 %v2013_v3  ;;  %1607 = vmatprep.subr.mxu1 %v2013_v3  ;;  %v177_v57 = vsub.f32 %v2136_v34, %v176_v46  ;;  %v2196_v58 = vand.u32 4294901760, %v27_v50  ;;  %v190_v59 = vand.u32 4294901760, %v2164_v47  ;;  %v2203_v61 = vsub.f32 %v29_v36, %v2160_v45 }
  0x1c   :  { %1581 = vmatpush3.msra.mxu0 %v2074_v12  ;;  %1608 = vmatpush3.msra.mxu1 %v143_v38  ;;  %v2207_v62 = vand.u32 4294901760, %v26_v54  ;;  %v171_v63 = vand.u32 4294901760, %v170_v52  ;;  %v184_v0 = vsub.f32 %v2157_v43, %v183_v53  ;;  %v197_v1 = vand.u32 4294901760, %v2187_v55 }
  0x1d   :  { %1582 = vmatprep.subr.mxu0 %v2013_v3  ;;  %1609 = vmatprep.subr.mxu1 %v2013_v3  ;;  %v2218_v7 = vsub.f32 %v28_v41, %v2173_v49  ;;  %v2222_v8 = vand.u32 4294901760, %v25_v60  ;;  %v178_v9 = vand.u32 4294901760, %v177_v57  ;;  %v191_v13 = vsub.f32 %v2164_v47, %v190_v59 }
  0x1e   :  { %1583 = vmatpush3.msra.mxu0 %v2093_v17  ;;  %1610 = vmatpush3.msra.mxu1 %v150_v44  ;;  %v204_v14 = vand.u32 4294901760, %v2203_v61  ;;  %v2230_v19 = vsub.f32 %v27_v50, %v2196_v58  ;;  %v2234_v26 = vand.u32 4294901760, %v24_v2  ;;  %v185_v31 = vand.u32 4294901760, %v184_v0 }
  0x1f   :  { %1584 = vmatprep.subr.mxu0 %v2013_v3  ;;  %1611 = vmatprep.subr.mxu1 %v2013_v3  ;;  %v198_v32 = vsub.f32 %v2187_v55, %v197_v1  ;;  %v211_v33 = vand.u32 4294901760, %v2218_v7  ;;  %v2242_v36 = vsub.f32 %v26_v54, %v2207_v62  ;;  %v192_v37 = vand.u32 4294901760, %v191_v13 }
  0x20   :  { %1585 = vmatpush3.msra.mxu0 %v2112_v25  ;;  %1612 = vmatpush3.msra.mxu1 %v157_v51  ;;  %v205_v38 = vsub.f32 %v2203_v61, %v204_v14  ;;  %v218_v39 = vand.u32 4294901760, %v2230_v19  ;;  %v2252_v41 = vsub.f32 %v25_v60, %v2222_v8  ;;  %v2262_v51 = vsub.f32 %v24_v2, %v2234_v26 }
  0x21   :  { %1586 = vmatprep.subr.mxu0 %v2013_v3  ;;  %1613 = vmatprep.subr.mxu1 %v2013_v3  ;;  %v199_v42 = vand.u32 4294901760, %v198_v32  ;;  %v212_v44 = vsub.f32 %v2218_v7, %v211_v33  ;;  %v225_v50 = vand.u32 4294901760, %v2242_v36  ;;  %vm1357_vm1 = vcmask 261120  }
  0x22   :  { %1587 = vmatpush3.msra.mxu0 %v2119_v28  ;;  %1614 = vmatpush3.msra.mxu1 %v164_v56  ;;  %v206_v54 = vand.u32 4294901760, %v205_v38  ;;  %v219_v56 = vsub.f32 %v2230_v19, %v218_v39  ;;  %v232_v57 = vand.u32 4294901760, %v2252_v41  ;;  %v239_v2 = vand.u32 4294901760, %v2262_v51 }
  0x23   :  { %1588 = vmatprep.subr.mxu0 %v2013_v3  ;;  %1615 = vmatprep.subr.mxu1 %v2013_v3  ;;  %v226_v0 = vsub.f32 %v2242_v36, %v225_v50 }
  0x24   :  { %1589 = vmatpush3.msra.mxu0 %v2139_v35  ;;  %1616 = vmatpush3.msra.mxu1 %v171_v63  ;;  %v213_v63 = vand.u32 4294901760, %v212_v44  ;;  %v220_v13 = vand.u32 4294901760, %v219_v56  ;;  %v240_v38 = vsub.f32 %v2262_v51, %v239_v2 }
  0x25   :  { %1590 = vmatprep.subr.mxu0 %v2013_v3  ;;  %1617 = vmatprep.subr.mxu1 %v2013_v3 }
  0x26   :  { %1591 = vmatpush3.msra.mxu0 %v2160_v45  ;;  %1618 = vmatpush3.msra.mxu1 %v178_v9 }
  0x27   :  { %1592 = vmatprep.subr.mxu0 %v2013_v3  ;;  %1619 = vmatprep.subr.mxu1 %v2013_v3  ;;  %v1995_v52 = vpop.eup %1994 }
  0x28   :  { %1593 = vmatpush3.msra.mxu0 %v2173_v49  ;;  %1620 = vmatpush3.msra.mxu1 %v185_v31  ;;  %v23_v60 = vmul.f32 0.6931472, %v1995_v52  ;;  %v233_v31 = vsub.f32 %v2252_v41, %v232_v57 }
  0x29   :  { %1594 = vmatprep.subr.mxu0 %v2013_v3  ;;  %1621 = vmatprep.subr.mxu1 %v2013_v3 }
  0x2a   :  { %1595 = vmatpush3.msra.mxu0 %v2196_v58  ;;  %1622 = vmatpush3.msra.mxu1 %v192_v37  ;;  %v2280_v9 = vand.u32 4294901760, %v23_v60  ;;  %v227_v37 = vand.u32 4294901760, %v226_v0  ;;  %v234_v44 = vand.u32 4294901760, %v233_v31 }
  0x2b   :  { %1596 = vmatprep.subr.mxu0 %v2013_v3  ;;  %1623 = vmatprep.subr.mxu1 %v2013_v3 }
  0x2c   :  { %1597 = vmatpush3.msra.mxu0 %v2207_v62  ;;  %1624 = vmatpush3.msra.mxu1 %v199_v42  ;;  %v2289_v32 = vsub.f32 %v23_v60, %v2280_v9 }
  0x2d   :  { %1598 = vmatprep.subr.mxu0 %v2013_v3  ;;  %1625 = vmatprep.subr.mxu1 %v2013_v3 }
  0x2e   :  { %1599 = vmatpush3.msra.mxu0 %v2222_v8  ;;  %1626 = vmatpush3.msra.mxu1 %v206_v54  ;;  %v123_v42 = vand.u32 4294901760, %v2289_v32  ;;  %v241_v54 = vand.u32 4294901760, %v240_v38  ;;  %v2605_v38 = vand.u32 4294901760, %v2169_v48 }
  0x2f   :  { %1600 = vmatprep.subr.mxu0 %v2013_v3  ;;  %1627 = vmatprep.subr.mxu1 %v2013_v3 }
  0x30   :  { %1601 = vmatpush3.msra.mxu0 %v2234_v26  ;;  %1628 = vmatpush3.msra.mxu1 %v213_v63  ;;  %v124_v52 = vsub.f32 %v2289_v32, %v123_v42  ;;  %v684_v63 = vld [vmem:[%s2880_s3 + $0x18] sm:$0xff] }
  0x31   :  { %1629 = vmatprep.subr.mxu1 %v2013_v3  ;;  %1640 = vmatprep.subr.mxu0 %v2013_v3 }
  0x32   :  { %1630 = vmatpush3.msra.mxu1 %v220_v13  ;;  %v125_v56 = vand.u32 4294901760, %v124_v52  ;;  %v2611_v52 = vand.u32 4294901760, %v684_v63 }
  0x33   :  { %1631 = vmatprep.subr.mxu1 %v2013_v3 }
  0x34   :  { %1632 = vmatpush3.msra.mxu1 %v227_v37  ;;  %1603 = vmatmul.mubr.f32.vlgmr.msra.gmra.mxu0 %v125_v56  ;;  %v683_v37 = vld [vmem:[%s2880_s3 + $0x10] sm:$0xff]  ;;  %v682_v56 = vld [vmem:[%s2880_s3 + $0x8] sm:$0xff] }
  0x35   :  { %1633 = vmatprep.subr.mxu1 %v2013_v3  ;;  %1641 = vmatpush3.msra.mxu0 %v2088_v15 }
  0x36   :  { %1634 = vmatpush3.msra.mxu1 %v234_v44  ;;  %1642 = vmatprep.subr.mxu0 %v2013_v3 }
  0x37   :  { %1635 = vmatprep.subr.mxu1 %v2013_v3  ;;  %1643 = vmatpush3.msra.mxu0 %v2091_v16 }
  0x38   :  { %1636 = vmatpush3.msra.mxu1 %v241_v54  ;;  %1644 = vmatprep.subr.mxu0 %v2013_v3 }
  0x39   :  { %1638 = vmatmul.mubr.f32.vlgmr.msra.gmra.mxu1 %v2280_v9  ;;  %1675 = vmatprep.subr.mxu1 %v2013_v3 }
  0x3a   :  { %1676 = vmatpush3.msra.mxu1 %v2054_v4  ;;  %1645 = vmatpush3.msra.mxu0 %v2096_v18 }
  0x3b   :  { %1677 = vmatprep.subr.mxu1 %v2013_v3  ;;  %1646 = vmatprep.subr.mxu0 %v2013_v3 }
  0x3c   :  { %1678 = vmatpush3.msra.mxu1 %v2056_v5  ;;  %1647 = vmatpush3.msra.mxu0 %v2103_v20 }
  0x3d   :  { %1679 = vmatprep.subr.mxu1 %v2013_v3  ;;  %1648 = vmatprep.subr.mxu0 %v2013_v3 }
  0x3e   :  { %1680 = vmatpush3.msra.mxu1 %v2058_v6  ;;  %1649 = vmatpush3.msra.mxu0 %v2106_v21  ;;  %v691_v21 = vld [vmem:[%s2880_s3 + $0x50] sm:$0xff] }
  0x3f   :  { %1681 = vmatprep.subr.mxu1 %v2013_v3  ;;  %1650 = vmatprep.subr.mxu0 %v2013_v3 }
  0x40   :  { %1682 = vmatpush3.msra.mxu1 %v2070_v10  ;;  %1651 = vmatpush3.msra.mxu0 %v2123_v30  ;;  %v689_v30 = vld [vmem:[%s2880_s3 + $0x40] sm:$0xff] }
  0x41   :  { %1683 = vmatprep.subr.mxu1 %v2013_v3  ;;  %1652 = vmatprep.subr.mxu0 %v2013_v3 }
  0x42   :  { %1684 = vmatpush3.msra.mxu1 %v2072_v11  ;;  %1653 = vmatpush3.msra.mxu0 %v2136_v34 }
  0x43   :  { %1685 = vmatprep.subr.mxu1 %v2013_v3  ;;  %1654 = vmatprep.subr.mxu0 %v2013_v3 }
  0x44   :  { %1686 = vmatpush3.msra.mxu1 %v2074_v12  ;;  %1655 = vmatpush3.msra.mxu0 %v2157_v43 }
  0x45   :  { %1687 = vmatprep.subr.mxu1 %v2013_v3  ;;  %1656 = vmatprep.subr.mxu0 %v2013_v3 }
  0x46   :  { %1688 = vmatpush3.msra.mxu1 %v2093_v17  ;;  %1657 = vmatpush3.msra.mxu0 %v2164_v47 }
  0x47   :  { %1689 = vmatprep.subr.mxu1 %v2013_v3  ;;  %1658 = vmatprep.subr.mxu0 %v2013_v3 }
  0x48   :  { %1690 = vmatpush3.msra.mxu1 %v2112_v25  ;;  %1659 = vmatpush3.msra.mxu0 %v2187_v55 }
  0x49   :  { %1691 = vmatprep.subr.mxu1 %v2013_v3  ;;  %1660 = vmatprep.subr.mxu0 %v2013_v3 }
  0x4a   :  { %1692 = vmatpush3.msra.mxu1 %v2119_v28  ;;  %1661 = vmatpush3.msra.mxu0 %v2203_v61 }
  0x4b   :  { %1693 = vmatprep.subr.mxu1 %v2013_v3  ;;  %1662 = vmatprep.subr.mxu0 %v2013_v3 }
  0x4c   :  { %1694 = vmatpush3.msra.mxu1 %v2139_v35  ;;  %1663 = vmatpush3.msra.mxu0 %v2218_v7 }
  0x4d   :  { %1695 = vmatprep.subr.mxu1 %v2013_v3  ;;  %1664 = vmatprep.subr.mxu0 %v2013_v3 }
  0x4e   :  { %1696 = vmatpush3.msra.mxu1 %v2160_v45  ;;  %1665 = vmatpush3.msra.mxu0 %v2230_v19 }
  0x4f   :  { %1697 = vmatprep.subr.mxu1 %v2013_v3  ;;  %1666 = vmatprep.subr.mxu0 %v2013_v3 }
  0x50   :  { %1672 = vmatprep.mubr.msk.f32.mxu0 %vm2014_vm0, %v2013_v3  ;;  %1667 = vmatpush3.msra.mxu0 %v2242_v36 }
  0x51   :  { %1698 = vmatpush3.msra.mxu1 %v2173_v49  ;;  %1668 = vmatprep.subr.mxu0 %v2013_v3 }
  0x52   :  { %1699 = vmatprep.subr.mxu1 %v2013_v3  ;;  %1669 = vmatpush3.msra.mxu0 %v2252_v41  ;;  %v685_v41 = vld [vmem:[%s2880_s3 + $0x20] sm:$0xff] }
  0x53   :  { %1700 = vmatpush3.msra.mxu1 %v2196_v58  ;;  %1670 = vmatprep.subr.mxu0 %v2013_v3  ;;  %v2593_v13 = vand.u32 4294901760, %v685_v41 }
  0x54   :  { %1701 = vmatprep.subr.mxu1 %v2013_v3  ;;  %1671 = vmatpush3.msra.mxu0 %v2262_v51 }
  0x55   :  { %1702 = vmatpush3.msra.mxu1 %v2207_v62  ;;  %1673 = vmatmul.mubr.f32.vlgmr.msra.gmra.mxu0 %v2289_v32 }
  0x56   :  { %1710 = vmatprep.subr.mxu0 %v2013_v3  ;;  %1703 = vmatprep.subr.mxu1 %v2013_v3 }
  0x57   :  { %1711 = vmatpush3.msra.mxu0 %v134_v22  ;;  %1704 = vmatpush3.msra.mxu1 %v2222_v8 }
  0x58   :  { %1712 = vmatprep.subr.mxu0 %v2013_v3  ;;  %1705 = vmatprep.subr.mxu1 %v2013_v3 }
  0x59   :  { %1713 = vmatpush3.msra.mxu0 %v141_v23  ;;  %1706 = vmatpush3.msra.mxu1 %v2234_v26 }
  0x5a   :  { %1714 = vmatprep.subr.mxu0 %v2013_v3  ;;  %1707 = vmatprep.mubr.msk.f32.mxu1 %vm2014_vm0, %v2013_v3 }
  0x5b   :  { %1715 = vmatpush3.msra.mxu0 %v148_v24  ;;  %1708 = vmatmul.mubr.f32.vlgmr.msra.gmra.mxu1 %v123_v42 }
  0x5c   :  { %1716 = vmatprep.subr.mxu0 %v2013_v3  ;;  %1745 = vmatprep.subr.mxu1 %v2013_v3 }
  0x5d   :  { %1717 = vmatpush3.msra.mxu0 %v155_v27  ;;  %1746 = vmatpush3.msra.mxu1 %v2054_v4  ;;  %v696_v4 = vld [vmem:[%s2880_s3 + $0x78] sm:$0xff] }
  0x5e   :  { %1718 = vmatprep.subr.mxu0 %v2013_v3  ;;  %1747 = vmatprep.subr.mxu1 %v2013_v3 }
  0x5f   :  { %1719 = vmatpush3.msra.mxu0 %v162_v29  ;;  %1748 = vmatpush3.msra.mxu1 %v2056_v5  ;;  %v695_v5 = vld [vmem:[%s2880_s3 + $0x70] sm:$0xff] }
  0x60   :  { %1720 = vmatprep.subr.mxu0 %v2013_v3  ;;  %1749 = vmatprep.subr.mxu1 %v2013_v3 }
  0x61   :  { %1721 = vmatpush3.msra.mxu0 %v169_v40  ;;  %1750 = vmatpush3.msra.mxu1 %v2058_v6  ;;  %v2434_v6 = vand.u32 4294901760, %v696_v4 }
  0x62   :  { %1722 = vmatprep.subr.mxu0 %v2013_v3  ;;  %1751 = vmatprep.subr.mxu1 %v2013_v3 }
  0x63   :  { %1723 = vmatpush3.msra.mxu0 %v176_v46  ;;  %1752 = vmatpush3.msra.mxu1 %v2070_v10  ;;  %v694_v10 = vld [vmem:[%s2880_s3 + $0x68] sm:$0xff]  ;;  %v2455_v15 = vsub.f32 %v696_v4, %v2434_v6  ;;  %v2521_v46 = vand.u32 4294901760, %v689_v30 }
  0x64   :  { %1724 = vmatprep.subr.mxu0 %v2013_v3  ;;  %1753 = vmatprep.subr.mxu1 %v2013_v3  ;;  %v2457_v16 = vand.u32 4294901760, %v694_v10 }
  0x65   :  { %1725 = vmatpush3.msra.mxu0 %v183_v53  ;;  %1754 = vmatpush3.msra.mxu1 %v2072_v11  ;;  %v2444_v11 = vand.u32 4294901760, %v695_v5  ;;  %v791_v24 = vand.u32 4294901760, %v2455_v15  ;;  %v2552_v7 = vsub.f32 %v689_v30, %v2521_v46  ;;  %v2638_v30 = vsub.f32 %v684_v63, %v2611_v52 }
  0x66   :  { %1726 = vmatprep.subr.mxu0 %v2013_v3  ;;  %1755 = vmatprep.subr.mxu1 %v2013_v3  ;;  %v2482_v22 = vsub.f32 %v694_v10, %v2457_v16  ;;  %v2625_v10 = vand.u32 4294901760, %v683_v37 }
  0x67   :  { %1727 = vmatpush3.msra.mxu0 %v190_v59  ;;  %1756 = vmatpush3.msra.mxu1 %v2074_v12  ;;  %v693_v12 = vld [vmem:[%s2880_s3 + $0x60] sm:$0xff]  ;;  %v2468_v18 = vsub.f32 %v695_v5, %v2444_v11  ;;  %v792_v40 = vsub.f32 %v2455_v15, %v791_v24  ;;  %v687_v59 = vld [vmem:[%s2880_s3 + $0x30] sm:$0xff]  ;;  %v840_v60 = vand.u32 4294901760, %v2552_v7  ;;  %v2623_v5 = vsub.f32 %v685_v41, %v2593_v13 }
  0x68   :  { %1728 = vmatprep.subr.mxu0 %v2013_v3  ;;  %1757 = vmatprep.subr.mxu1 %v2013_v3  ;;  %v2470_v20 = vand.u32 4294901760, %v693_v12  ;;  %v805_v43 = vand.u32 4294901760, %v2482_v22 }
  0x69   :  { %1729 = vmatpush3.msra.mxu0 %v197_v1  ;;  %1758 = vmatpush3.msra.mxu1 %v2093_v17  ;;  %v692_v17 = vld [vmem:[%s2880_s3 + $0x58] sm:$0xff]  ;;  %v798_v29 = vand.u32 4294901760, %v2468_v18  ;;  %v793_v61 = vand.u32 4294901760, %v792_v40  ;;  %v841_v54 = vsub.f32 %v2552_v7, %v840_v60  ;;  %v2640_v40 = vand.u32 4294901760, %v682_v56 }
  0x6a   :  { %1730 = vmatprep.subr.mxu0 %v2013_v3  ;;  %1759 = vmatprep.subr.mxu1 %v2013_v3  ;;  %v2484_v23 = vand.u32 4294901760, %v692_v17  ;;  %v2495_v27 = vsub.f32 %v693_v12, %v2470_v20 }
  0x6b   :  { %1731 = vmatpush3.msra.mxu0 %v204_v14  ;;  %1760 = vmatpush3.msra.mxu1 %v2112_v25  ;;  %v690_v25 = vld [vmem:[%s2880_s3 + $0x48] sm:$0xff] }
  0x6c   :  { %1732 = vmatprep.subr.mxu0 %v2013_v3  ;;  %1761 = vmatprep.subr.mxu1 %v2013_v3  ;;  %v2505_v34 = vand.u32 4294901760, %v690_v25  ;;  %v812_v53 = vand.u32 4294901760, %v2495_v27 }
  0x6d   :  { %1733 = vmatpush3.msra.mxu0 %v211_v33  ;;  %1762 = vmatpush3.msra.mxu1 %v2119_v28  ;;  %v2497_v28 = vand.u32 4294901760, %v691_v21 }
  0x6e   :  { %1734 = vmatprep.subr.mxu0 %v2013_v3  ;;  %1763 = vmatprep.subr.mxu1 %v2013_v3  ;;  %v2535_v55 = vsub.f32 %v690_v25, %v2505_v34  ;;  %v813_v19 = vsub.f32 %v2495_v27, %v812_v53  ;;  %v681_v25 = vld [vmem:[%s2880_s3] sm:$0xff] }
  0x6f   :  { %1735 = vmatpush3.msra.mxu0 %v218_v39  ;;  %1764 = vmatpush3.msra.mxu1 %v2139_v35  ;;  %v2510_v35 = vsub.f32 %v692_v17, %v2484_v23  ;;  %v2526_v47 = vsub.f32 %v691_v21, %v2497_v28 }
  0x70   :  { %1736 = vmatprep.subr.mxu0 %v2013_v3  ;;  %1765 = vmatprep.subr.mxu1 %v2013_v3  ;;  %v833_v39 = vand.u32 4294901760, %v2535_v55  ;;  %v814_v0 = vand.u32 4294901760, %v813_v19  ;;  %v2663_v19 = vsub.f32 %v682_v56, %v2640_v40 }
  0x71   :  { %1737 = vmatpush3.msra.mxu0 %v225_v50  ;;  %1766 = vmatpush3.msra.mxu1 %v2160_v45  ;;  %v688_v45 = vld [vmem:[%s2880_s3 + $0x38] sm:$0xff]  ;;  %v819_v1 = vand.u32 4294901760, %v2510_v35  ;;  %v826_v33 = vand.u32 4294901760, %v2526_v47 }
  0x72   :  { %1738 = vmatprep.subr.mxu0 %v2013_v3  ;;  %1767 = vmatprep.subr.mxu1 %v2013_v3  ;;  %v834_v31 = vsub.f32 %v2535_v55, %v833_v39  ;;  %v889_v56 = vand.u32 4294901760, %v2663_v19 }
  0x73   :  { %1739 = vmatpush3.msra.mxu0 %v232_v57  ;;  %1742 = vmatprep.mubr.msk.f32.mxu0 %vm2014_vm0, %v2013_v3  ;;  %v820_v51 = vsub.f32 %v2510_v35, %v819_v1 }
  0x74   :  { %1740 = vmatprep.subr.mxu0 %v2013_v3  ;;  %1768 = vmatpush3.msra.mxu1 %v2173_v49  ;;  %v799_v49 = vsub.f32 %v2468_v18, %v798_v29  ;;  %v835_v17 = vand.u32 4294901760, %v834_v31 }
  0x75   :  { %1741 = vmatpush3.msra.mxu0 %v239_v2  ;;  %1769 = vmatprep.subr.mxu1 %v2013_v3  ;;  %v821_v42 = vand.u32 4294901760, %v820_v51  ;;  %v875_v51 = vand.u32 4294901760, %v2638_v30 }
  0x76   :  { %1743 = vmatmul.mubr.f32.vlgmr.msra.gmra.mxu0 %v2280_v9  ;;  %1780 = vmatprep.subr.mxu0 %v2013_v3  ;;  %v800_v14 = vand.u32 4294901760, %v799_v49  ;;  %v2645_v49 = vsub.f32 %v2169_v48, %v2605_v38  ;;  %v868_v48 = vand.u32 4294901760, %v2623_v5 }
  0x77   :  { %1770 = vmatpush3.msra.mxu1 %v2196_v58  ;;  %1781 = vmatpush3.msra.mxu0 %v2434_v6  ;;  %v2537_v58 = vand.u32 4294901760, %v688_v45 }
  0x78   :  { %1771 = vmatprep.subr.mxu1 %v2013_v3  ;;  %1782 = vmatprep.subr.mxu0 %v2013_v3 }
  0x79   :  { %1772 = vmatpush3.msra.mxu1 %v2207_v62  ;;  %1783 = vmatpush3.msra.mxu0 %v2444_v11  ;;  %v806_v62 = vsub.f32 %v2482_v22, %v805_v43  ;;  %v2568_v36 = vsub.f32 %v688_v45, %v2537_v58 }
  0x7a   :  { %1773 = vmatprep.subr.mxu1 %v2013_v3  ;;  %1784 = vmatprep.subr.mxu0 %v2013_v3 }
  0x7b   :  { %1774 = vmatpush3.msra.mxu1 %v2222_v8  ;;  %1785 = vmatpush3.msra.mxu0 %v2457_v16  ;;  %v686_v8 = vld [vmem:[%s2880_s3 + $0x28] sm:$0xff]  ;;  %v807_v50 = vand.u32 4294901760, %v806_v62  ;;  %v847_v32 = vand.u32 4294901760, %v2568_v36  ;;  %s1364_s3 = sld [smem:[#allocation3 + $0x2]] }
  0x7c   :  { %1775 = vmatprep.subr.mxu1 %v2013_v3  ;;  %1786 = vmatprep.subr.mxu0 %v2013_v3  ;;  %v2578_v57 = vand.u32 4294901760, %v686_v8 }
  0x7d   :  { %1776 = vmatpush3.msra.mxu1 %v2234_v26  ;;  %1777 = vmatprep.mubr.msk.f32.mxu1 %vm2014_vm0, %v2013_v3  ;;  %v2562_v26 = vand.u32 4294901760, %v687_v59  ;;  %v848_v21 = vsub.f32 %v2568_v36, %v847_v32 }
  0x7e   :  { %1787 = vmatpush3.msra.mxu0 %v2470_v20  ;;  %1778 = vmatmul.mubr.f32.vlgmr.msra.gmra.mxu1 %v2280_v9  ;;  %v827_v9 = vsub.f32 %v2526_v47, %v826_v33  ;;  %v2609_v44 = vsub.f32 %v686_v8, %v2578_v57  ;;  %v2656_v8 = vand.u32 4294901760, %v681_v25 }
  0x7f   :  { %1788 = vmatprep.subr.mxu0 %v2013_v3  ;;  %1815 = vmatprep.subr.mxu1 %v2013_v3  ;;  %v2588_v2 = vsub.f32 %v687_v59, %v2562_v26  ;;  %v842_v59 = vand.u32 4294901760, %v841_v54  ;;  %v876_v54 = vsub.f32 %v2638_v30, %v875_v51 }
  0x80   :  { %1789 = vmatpush3.msra.mxu0 %v2484_v23  ;;  %1816 = vmatpush3.msra.mxu1 %v793_v61  ;;  %v828_v4 = vand.u32 4294901760, %v827_v9  ;;  %v861_v45 = vand.u32 4294901760, %v2609_v44  ;;  %v2651_v61 = vsub.f32 %v683_v37, %v2625_v10  ;;  %v869_v9 = vsub.f32 %v2623_v5, %v868_v48 }
  0x81   :  { %1790 = vmatprep.subr.mxu0 %v2013_v3  ;;  %1817 = vmatprep.subr.mxu1 %v2013_v3  ;;  %v854_v12 = vand.u32 4294901760, %v2588_v2 }
  0x82   :  { %1791 = vmatpush3.msra.mxu0 %v2497_v28  ;;  %1818 = vmatpush3.msra.mxu1 %v800_v14  ;;  %v849_v14 = vand.u32 4294901760, %v848_v21  ;;  %v862_v41 = vsub.f32 %v2609_v44, %v861_v45  ;;  %v882_v31 = vand.u32 4294901760, %v2651_v61 }
  0x83   :  { %1792 = vmatprep.subr.mxu0 %v2013_v3  ;;  %1819 = vmatprep.subr.mxu1 %v2013_v3  ;;  %v855_v62 = vsub.f32 %v2588_v2, %v854_v12 }
  0x84   :  { %1793 = vmatpush3.msra.mxu0 %v2505_v34  ;;  %1820 = vmatpush3.msra.mxu1 %v807_v50  ;;  %v780_v50 = vand.u32 4294901760, %v2645_v49  ;;  %v863_v37 = vand.u32 4294901760, %v862_v41 }
  0x85   :  { %1794 = vmatprep.subr.mxu0 %v2013_v3  ;;  %1821 = vmatprep.subr.mxu1 %v2013_v3  ;;  %v856_v63 = vand.u32 4294901760, %v855_v62  ;;  %v890_v62 = vsub.f32 %v2663_v19, %v889_v56 }
  0x86   :  { %1795 = vmatpush3.msra.mxu0 %v2521_v46  ;;  %1822 = vmatpush3.msra.mxu1 %v814_v0  ;;  %v2674_v0 = vsub.f32 %v681_v25, %v2656_v8 }
  0x87   :  { %1796 = vmatprep.subr.mxu0 %v2013_v3  ;;  %1823 = vmatprep.subr.mxu1 %v2013_v3 }
  0x88   :  { %1797 = vmatpush3.msra.mxu0 %v2537_v58  ;;  %1824 = vmatpush3.msra.mxu1 %v821_v42  ;;  %v781_v42 = vsub.f32 %v2645_v49, %v780_v50  ;;  %v896_v21 = vand.u32 4294901760, %v2674_v0 }
  0x89   :  { %1798 = vmatprep.subr.mxu0 %v2013_v3  ;;  %1825 = vmatprep.subr.mxu1 %v2013_v3 }
  0x8a   :  { %1799 = vmatpush3.msra.mxu0 %v2562_v26  ;;  %1826 = vmatpush3.msra.mxu1 %v828_v4  ;;  %v870_v4 = vand.u32 4294901760, %v869_v9  ;;  %v782_v25 = vand.u32 4294901760, %v781_v42  ;;  %v897_v41 = vsub.f32 %v2674_v0, %v896_v21 }
  0x8b   :  { %1800 = vmatprep.subr.mxu0 %v2013_v3  ;;  %1827 = vmatprep.subr.mxu1 %v2013_v3 }
  0x8c   :  { %1801 = vmatpush3.msra.mxu0 %v2578_v57  ;;  %1828 = vmatpush3.msra.mxu1 %v835_v17  ;;  %v883_v17 = vsub.f32 %v2651_v61, %v882_v31  ;;  %v898_v9 = vand.u32 4294901760, %v897_v41 }
  0x8d   :  { %1802 = vmatprep.subr.mxu0 %v2013_v3  ;;  %1829 = vmatprep.subr.mxu1 %v2013_v3 }
  0x8e   :  { %1803 = vmatpush3.msra.mxu0 %v2593_v13  ;;  %1830 = vmatpush3.msra.mxu1 %v842_v59  ;;  %v877_v59 = vand.u32 4294901760, %v876_v54 }
  0x8f   :  { %1804 = vmatprep.subr.mxu0 %v2013_v3  ;;  %1831 = vmatprep.subr.mxu1 %v2013_v3 }
  0x90   :  { %1805 = vmatpush3.msra.mxu0 %v2611_v52  ;;  %1832 = vmatpush3.msra.mxu1 %v849_v14  ;;  %v884_v14 = vand.u32 4294901760, %v883_v17 }
  0x91   :  { %1806 = vmatprep.subr.mxu0 %v2013_v3  ;;  %1833 = vmatprep.subr.mxu1 %v2013_v3 }
  0x92   :  { %1807 = vmatpush3.msra.mxu0 %v2625_v10  ;;  %1834 = vmatpush3.msra.mxu1 %v856_v63  ;;  %v891_v63 = vand.u32 4294901760, %v890_v62 }
  0x93   :  { %1808 = vmatprep.subr.mxu0 %v2013_v3  ;;  %1835 = vmatprep.subr.mxu1 %v2013_v3 }
  0x94   :  { %1809 = vmatpush3.msra.mxu0 %v2640_v40  ;;  %1836 = vmatpush3.msra.mxu1 %v863_v37 }
  0x95   :  { %1810 = vmatprep.subr.mxu0 %v2013_v3  ;;  %1837 = vmatprep.subr.mxu1 %v2013_v3 }
  0x96   :  { %1811 = vmatpush3.msra.mxu0 %v2656_v8  ;;  %1838 = vmatpush3.msra.mxu1 %v870_v4 }
  0x97   :  { %1812 = vmatprep.mubr.msk.f32.mxu0 %vm2014_vm0, %v2013_v3  ;;  %1839 = vmatprep.subr.mxu1 %v2013_v3 }
  0x98   :  { %1850 = vmatprep.subr.mxu0 %v2013_v3  ;;  %1813 = vmatmul.mubr.f32.vlgmr.msra.gmra.mxu0 %v782_v25 }
  0x99   :  { %1840 = vmatpush3.msra.mxu1 %v877_v59  ;;  %1851 = vmatpush3.msra.mxu0 %v2455_v15 }
  0x9a   :  { %1841 = vmatprep.subr.mxu1 %v2013_v3  ;;  %1852 = vmatprep.subr.mxu0 %v2013_v3 }
  0x9b   :  { %1842 = vmatpush3.msra.mxu1 %v884_v14  ;;  %1853 = vmatpush3.msra.mxu0 %v2468_v18 }
  0x9c   :  { %1843 = vmatprep.subr.mxu1 %v2013_v3  ;;  %1854 = vmatprep.subr.mxu0 %v2013_v3 }
  0x9d   :  { %1844 = vmatpush3.msra.mxu1 %v891_v63  ;;  %1855 = vmatpush3.msra.mxu0 %v2482_v22 }
  0x9e   :  { %1845 = vmatprep.subr.mxu1 %v2013_v3  ;;  %1856 = vmatprep.subr.mxu0 %v2013_v3 }
  0x9f   :  { %1846 = vmatpush3.msra.mxu1 %v898_v9  ;;  %1847 = vmatprep.mubr.msk.f32.mxu1 %vm2014_vm0, %v2013_v3 }
  0xa0   :  { %1857 = vmatpush3.msra.mxu0 %v2495_v27  ;;  %1848 = vmatmul.mubr.f32.vlgmr.msra.gmra.mxu1 %v2605_v38 }
  0xa1   :  { %1858 = vmatprep.subr.mxu0 %v2013_v3  ;;  %1885 = vmatprep.subr.mxu1 %v2013_v3 }
  0xa2   :  { %1859 = vmatpush3.msra.mxu0 %v2510_v35  ;;  %1886 = vmatpush3.msra.mxu1 %v2434_v6 }
  0xa3   :  { %1860 = vmatprep.subr.mxu0 %v2013_v3  ;;  %1887 = vmatprep.subr.mxu1 %v2013_v3 }
  0xa4   :  { %1861 = vmatpush3.msra.mxu0 %v2526_v47  ;;  %1888 = vmatpush3.msra.mxu1 %v2444_v11 }
  0xa5   :  { %1862 = vmatprep.subr.mxu0 %v2013_v3  ;;  %1889 = vmatprep.subr.mxu1 %v2013_v3 }
  0xa6   :  { %1863 = vmatpush3.msra.mxu0 %v2535_v55  ;;  %1890 = vmatpush3.msra.mxu1 %v2457_v16 }
  0xa7   :  { %1864 = vmatprep.subr.mxu0 %v2013_v3  ;;  %1891 = vmatprep.subr.mxu1 %v2013_v3 }
  0xa8   :  { %1865 = vmatpush3.msra.mxu0 %v2552_v7  ;;  %1892 = vmatpush3.msra.mxu1 %v2470_v20 }
  0xa9   :  { %1866 = vmatprep.subr.mxu0 %v2013_v3  ;;  %1893 = vmatprep.subr.mxu1 %v2013_v3 }
  0xaa   :  { %1867 = vmatpush3.msra.mxu0 %v2568_v36  ;;  %1894 = vmatpush3.msra.mxu1 %v2484_v23 }
  0xab   :  { %1868 = vmatprep.subr.mxu0 %v2013_v3  ;;  %1895 = vmatprep.subr.mxu1 %v2013_v3 }
  0xac   :  { %1869 = vmatpush3.msra.mxu0 %v2588_v2  ;;  %1896 = vmatpush3.msra.mxu1 %v2497_v28 }
  0xad   :  { %1870 = vmatprep.subr.mxu0 %v2013_v3  ;;  %1897 = vmatprep.subr.mxu1 %v2013_v3 }
  0xae   :  { %1871 = vmatpush3.msra.mxu0 %v2609_v44  ;;  %1898 = vmatpush3.msra.mxu1 %v2505_v34 }
  0xaf   :  { %1872 = vmatprep.subr.mxu0 %v2013_v3  ;;  %1899 = vmatprep.subr.mxu1 %v2013_v3 }
  0xb0   :  { %1873 = vmatpush3.msra.mxu0 %v2623_v5  ;;  %1900 = vmatpush3.msra.mxu1 %v2521_v46 }
  0xb1   :  { %1874 = vmatprep.subr.mxu0 %v2013_v3  ;;  %1901 = vmatprep.subr.mxu1 %v2013_v3 }
  0xb2   :  { %1875 = vmatpush3.msra.mxu0 %v2638_v30  ;;  %1902 = vmatpush3.msra.mxu1 %v2537_v58 }
  0xb3   :  { %1876 = vmatprep.subr.mxu0 %v2013_v3  ;;  %1903 = vmatprep.subr.mxu1 %v2013_v3 }
  0xb4   :  { %1877 = vmatpush3.msra.mxu0 %v2651_v61  ;;  %1904 = vmatpush3.msra.mxu1 %v2562_v26 }
  0xb5   :  { %1878 = vmatprep.subr.mxu0 %v2013_v3  ;;  %1905 = vmatprep.subr.mxu1 %v2013_v3 }
  0xb6   :  { %1879 = vmatpush3.msra.mxu0 %v2663_v19  ;;  %1906 = vmatpush3.msra.mxu1 %v2578_v57 }
  0xb7   :  { %1880 = vmatprep.subr.mxu0 %v2013_v3  ;;  %1907 = vmatprep.subr.mxu1 %v2013_v3 }
  0xb8   :  { %1881 = vmatpush3.msra.mxu0 %v2674_v0  ;;  %1882 = vmatprep.mubr.msk.f32.mxu0 %vm2014_vm0, %v2013_v3 }
  0xb9   :  { %1908 = vmatpush3.msra.mxu1 %v2593_v13  ;;  %1883 = vmatmul.mubr.f32.vlgmr.msra.gmra.mxu0 %v2645_v49 }
  0xba   :  { %1909 = vmatprep.subr.mxu1 %v2013_v3  ;;  %1920 = vmatprep.subr.mxu0 %v2013_v3 }
  0xbb   :  { %1910 = vmatpush3.msra.mxu1 %v2611_v52  ;;  %1921 = vmatpush3.msra.mxu0 %v791_v24 }
  0xbc   :  { %1911 = vmatprep.subr.mxu1 %v2013_v3  ;;  %1922 = vmatprep.subr.mxu0 %v2013_v3 }
  0xbd   :  { %1912 = vmatpush3.msra.mxu1 %v2625_v10  ;;  %1923 = vmatpush3.msra.mxu0 %v798_v29 }
  0xbe   :  { %1913 = vmatprep.subr.mxu1 %v2013_v3  ;;  %1924 = vmatprep.subr.mxu0 %v2013_v3 }
  0xbf   :  { %1914 = vmatpush3.msra.mxu1 %v2640_v40  ;;  %1925 = vmatpush3.msra.mxu0 %v805_v43 }
  0xc0   :  { %1915 = vmatprep.subr.mxu1 %v2013_v3  ;;  %1926 = vmatprep.subr.mxu0 %v2013_v3 }
  0xc1   :  { %1916 = vmatpush3.msra.mxu1 %v2656_v8  ;;  %1917 = vmatprep.mubr.msk.f32.mxu1 %vm2014_vm0, %v2013_v3 }
  0xc2   :  { %1927 = vmatpush3.msra.mxu0 %v812_v53  ;;  %1918 = vmatmul.mubr.f32.vlgmr.msra.gmra.mxu1 %v780_v50 }
  0xc3   :  { %1928 = vmatprep.subr.mxu0 %v2013_v3  ;;  %1955 = vmatprep.subr.mxu1 %v2013_v3 }
  0xc4   :  { %1929 = vmatpush3.msra.mxu0 %v819_v1  ;;  %1956 = vmatpush3.msra.mxu1 %v2434_v6 }
  0xc5   :  { %1930 = vmatprep.subr.mxu0 %v2013_v3  ;;  %1957 = vmatprep.subr.mxu1 %v2013_v3 }
  0xc6   :  { %1931 = vmatpush3.msra.mxu0 %v826_v33  ;;  %1958 = vmatpush3.msra.mxu1 %v2444_v11 }
  0xc7   :  { %1932 = vmatprep.subr.mxu0 %v2013_v3  ;;  %1959 = vmatprep.subr.mxu1 %v2013_v3 }
  0xc8   :  { %1933 = vmatpush3.msra.mxu0 %v833_v39  ;;  %1960 = vmatpush3.msra.mxu1 %v2457_v16 }
  0xc9   :  { %1934 = vmatprep.subr.mxu0 %v2013_v3  ;;  %1961 = vmatprep.subr.mxu1 %v2013_v3 }
  0xca   :  { %1935 = vmatpush3.msra.mxu0 %v840_v60  ;;  %1962 = vmatpush3.msra.mxu1 %v2470_v20 }
  0xcb   :  { %1936 = vmatprep.subr.mxu0 %v2013_v3  ;;  %1963 = vmatprep.subr.mxu1 %v2013_v3 }
  0xcc   :  { %1937 = vmatpush3.msra.mxu0 %v847_v32  ;;  %1964 = vmatpush3.msra.mxu1 %v2484_v23 }
  0xcd   :  { %1938 = vmatprep.subr.mxu0 %v2013_v3  ;;  %1965 = vmatprep.subr.mxu1 %v2013_v3 }
  0xce   :  { %1939 = vmatpush3.msra.mxu0 %v854_v12  ;;  %1966 = vmatpush3.msra.mxu1 %v2497_v28 }
  0xcf   :  { %1940 = vmatprep.subr.mxu0 %v2013_v3  ;;  %1967 = vmatprep.subr.mxu1 %v2013_v3 }
  0xd0   :  { %1941 = vmatpush3.msra.mxu0 %v861_v45  ;;  %1968 = vmatpush3.msra.mxu1 %v2505_v34  ;;  %v1354_v45 = vstv %s1363_s30 }
  0xd1   :  { %1942 = vmatprep.subr.mxu0 %v2013_v3  ;;  %1969 = vmatprep.subr.mxu1 %v2013_v3 }
  0xd2   :  { %1943 = vmatpush3.msra.mxu0 %v868_v48  ;;  %1970 = vmatpush3.msra.mxu1 %v2521_v46 }
  0xd3   :  { %1944 = vmatprep.subr.mxu0 %v2013_v3  ;;  %1971 = vmatprep.subr.mxu1 %v2013_v3 }
  0xd4   :  { %1945 = vmatpush3.msra.mxu0 %v875_v51  ;;  %1972 = vmatpush3.msra.mxu1 %v2537_v58 }
  0xd5   :  { %1946 = vmatprep.subr.mxu0 %v2013_v3  ;;  %1973 = vmatprep.subr.mxu1 %v2013_v3 }
  0xd6   :  { %1947 = vmatpush3.msra.mxu0 %v882_v31  ;;  %1974 = vmatpush3.msra.mxu1 %v2562_v26 }
  0xd7   :  { %1948 = vmatprep.subr.mxu0 %v2013_v3  ;;  %1975 = vmatprep.subr.mxu1 %v2013_v3 }
  0xd8   :  { %1949 = vmatpush3.msra.mxu0 %v889_v56  ;;  %1976 = vmatpush3.msra.mxu1 %v2578_v57 }
  0xd9   :  { %1950 = vmatprep.subr.mxu0 %v2013_v3  ;;  %1977 = vmatprep.subr.mxu1 %v2013_v3 }
  0xda   :  { %1951 = vmatpush3.msra.mxu0 %v896_v21  ;;  %1952 = vmatprep.mubr.msk.f32.mxu0 %vm2014_vm0, %v2013_v3 }
  0xdb   :  { %1978 = vmatpush3.msra.mxu1 %v2593_v13  ;;  %1953 = vmatmul.mubr.f32.vlgmr.msra.gmra.mxu0 %v2605_v38 }
  0xdc   :  { %1979 = vmatprep.subr.mxu1 %v2013_v3  ;;  %1987 = vmatprep.mubr.msk.f32.mxu1 %vm2014_vm0, %v2013_v3 }
  0xdd   :  { %1980 = vmatpush3.msra.mxu1 %v2611_v52 }
  0xde   :  { %1981 = vmatprep.subr.mxu1 %v2013_v3 }
  0xdf   :  { %1982 = vmatpush3.msra.mxu1 %v2625_v10  ;;  %v1347_v10 = vstv %s1364_s3 }
  0xe0   :  { %1983 = vmatprep.subr.mxu1 %v2013_v3 }
  0xe1   :  { %1984 = vmatpush3.msra.mxu1 %v2640_v40  ;;  %v1345_v40 = vstv %s1344_s5 }
  0xe2   :  { %1985 = vmatprep.subr.mxu1 %v2013_v3 }
  0xe3   :  { %1986 = vmatpush3.msra.mxu1 %v2656_v8 }
  0xe4   :  { %1988 = vmatmul.mubr.f32.vlgmr.msra.gmra.mxu1 %v2605_v38 }
  0xf4   :  { %v127_v6 = vpop.f32.mrf.mxu0 }
  0xf6   :  { %v1604_v11 = vpop.f32.mrf.mxu0 }
  0xf9   :  { %v278_v15 = vpop.f32.mrf.mxu1 }
  0xfa   :  { %v279_v16 = vadd.f32 %v278_v15, %v127_v6 }
  0xfb   :  { %v1639_v18 = vpop.f32.mrf.mxu1 }
 0x115   :  { %v382_v20 = vpop.f32.mrf.mxu0 }
 0x116   :  { %v383_v22 = vadd.f32 %v382_v20, %v279_v16 }
 0x117   :  { %v1674_v23 = vpop.f32.mrf.mxu0 }
 0x11b   :  { %v471_v24 = vpop.f32.mrf.mxu1 }
 0x11c   :  { %v472_v27 = vadd.f32 %v471_v24, %v383_v22 }
 0x11d   :  { %v1709_v28 = vpop.f32.mrf.mxu1 }
 0x136   :  { %v590_v29 = vpop.f32.mrf.mxu0 }
 0x137   :  { %v591_v34 = vadd.f32 %v590_v29, %v472_v27 }
 0x138   :  { %v1744_v35 = vpop.f32.mrf.mxu0 }
 0x13e   :  { %v677_v43 = vpop.f32.mrf.mxu1 }
 0x13f   :  { %v678_v3 = vadd.f32 %v677_v43, %v591_v34 }
 0x140   :  { %v1779_v46 = vpop.f32.mrf.mxu1 }
 0x141   :  { %v1346_v49 = vadd.f32 %v1345_v40, %v678_v3 }
 0x158   :  { %v784_v47 = vpop.f32.mrf.mxu0 }
 0x159   :  { %v785_v36 = vadd.f32 1.0, %v784_v47 }
 0x15a   :  { %v1814_v53 = vpop.f32.mrf.mxu0 }
 0x160   :  { %v935_v55 = vpop.f32.mrf.mxu1 }
 0x161   :  { %v936_v57 = vadd.f32 %v935_v55, %v785_v36 }
 0x162   :  { %v1849_v58 = vpop.f32.mrf.mxu1 }
 0x179   :  { %v1039_v1 = vpop.f32.mrf.mxu0 }
 0x17a   :  { %v1040_v2 = vadd.f32 %v1039_v1, %v936_v57 }
 0x17b   :  { %v1884_v7 = vpop.f32.mrf.mxu0 }
 0x182   :  { %v1128_v26 = vpop.f32.mrf.mxu1 }
 0x183   :  { %v1129_v13 = vadd.f32 %v1128_v26, %v1040_v2 }
 0x184   :  { %v1919_v33 = vpop.f32.mrf.mxu1 }
 0x19b   :  { %v1247_v39 = vpop.f32.mrf.mxu0 }
 0x19c   :  { %v1248_v32 = vadd.f32 %v1247_v39, %v1129_v13 }
 0x19d   :  { %v1954_v60 = vpop.f32.mrf.mxu0 }
 0x1a4   :  { %v1334_v38 = vpop.f32.mrf.mxu1 }
 0x1a5   :  { %v1335_v44 = vadd.f32 %v1334_v38, %v1248_v32 }
 0x1a6   :  { %v1989_v52 = vpop.f32.mrf.mxu1 }
 0x1a7   :  { %1996 = vlog2.f32 %v1335_v44 }
 0x1b4   :  { %v1997_v5 = vpop.eup %1996 }
 0x1b5   :  { %v1339_v12 = vmul.f32 0.6931472, %v1997_v5 }
 0x1b7   :  { %v1348_v30 = vmul.f32 %v1347_v10, %v1339_v12  ;;  %v1355_v48 = vmul.f32 %v1354_v45, %v1339_v12 }
 0x1b9   :  { %1350 = vrot.lane.b32.xlu0 %v1348_v30, %s2015_s27 }
 0x22b   :  { %v1351_v61 = vpop.permute.xlu0 %1350 }
 0x22c   :  { %v1353_v8 = vadd.f32 %v1351_v61, %v1346_v49 }
 0x22e   :  { %v1356_v19 = vsub.f32 %v1353_v8, %v1355_v48 }
 0x230   :  { %1358 = vst.msk [vmem:[%s2881_s4] sm:$0xff] %vm1357_vm1, %v1356_v19 }

</bundles_post_ra>
